<compile_context>
chip_gen: v7x
topology: tpu7x:2x2x1
jax: 0.10.0
libtpu: 0.0.40
codegen_flags: <defaults>
</compile_context>

<pallas_src>
import jax
import jax.numpy as jnp
from jax.experimental import pallas as pl
from jax.experimental.pallas import tpu as pltpu


def _gcn_layer1_kernel(a_ref, x_ref, w1_ref, b1_ref, drop_ref, h_ref):
    # (A_tile @ X) @ W1 + b1  ->  ReLU  ->  inverted dropout.
    ax = jnp.dot(a_ref[...], x_ref[...], preferred_element_type=jnp.float32)
    h = jnp.dot(ax.astype(jnp.bfloat16), w1_ref[...],
                preferred_element_type=jnp.float32) + b1_ref[...]
    h = jnp.maximum(h, 0.0)
    h_ref[...] = (h * drop_ref[...]).astype(h_ref.dtype)


def _gcn_layer2_kernel(a_ref, h_ref, w2_ref, b2_ref, w3_ref, b3_ref, o_ref):
    # (A_tile @ H) @ W2 + b2  ->  ReLU  ->  Linear (lane-dense, padded cols).
    ah = jnp.dot(a_ref[...], h_ref[...], preferred_element_type=jnp.float32)
    g = jnp.dot(ah.astype(jnp.bfloat16), w2_ref[...],
                preferred_element_type=jnp.float32) + b2_ref[...]
    g = jnp.maximum(g, 0.0)
    o_ref[...] = jnp.dot(g.astype(jnp.bfloat16), w3_ref[...],
                         preferred_element_type=jnp.float32) + b3_ref[...]


def _row_tile(n):
    """Largest nice row-tile that divides n (falls back to full n)."""
    for t in (512, 256, 128, 64, 32, 16, 8):
        if n % t == 0:
            return t
    return n


def gcn_forward(params, x, a_norm, dropout_key, p=0.3, training=True):
    n, in_c = x.shape
    hid = params["w1"].shape[1]
    out_c = params["w3"].shape[1]
    out_pad = 128                     # lane-dense output width

    tm = _row_tile(n)
    grid = (n // tm,)

    # bf16 MXU operands (accumulation stays f32 inside the kernels).
    a_bf = a_norm.astype(jnp.bfloat16)
    x_bf = x.astype(jnp.bfloat16)
    w1 = params["w1"].astype(jnp.bfloat16)
    w2 = params["w2"].astype(jnp.bfloat16)
    w3p = jnp.zeros((hid, out_pad), jnp.bfloat16).at[:, :out_c].set(
        params["w3"].astype(jnp.bfloat16))
    b1 = params["b1"].reshape(1, hid).astype(jnp.float32)
    b2 = params["b2"].reshape(1, hid).astype(jnp.float32)
    b3p = jnp.zeros((1, out_pad), jnp.float32).at[:, :out_c].set(
        params["b3"].reshape(1, out_c).astype(jnp.float32))

    # Inverted-dropout scale mask (F.dropout default: training=True, p=0.3).
    if training and p > 0.0:
        keep = jax.random.uniform(dropout_key, (n, hid), jnp.float32) >= p
        drop_scale = keep.astype(jnp.float32) * (1.0 / (1.0 - p))
    else:
        drop_scale = jnp.ones((n, hid), jnp.float32)

    row = lambda i: (i, 0)     # row-tiled along destination nodes
    full = lambda i: (0, 0)    # resident full array
    cparams = pltpu.CompilerParams(dimension_semantics=("parallel",))

    # --- GCNConv 1 + ReLU + dropout ---
    h1 = pl.pallas_call(
        _gcn_layer1_kernel,
        out_shape=jax.ShapeDtypeStruct((n, hid), jnp.bfloat16),
        grid=grid,
        in_specs=[pl.BlockSpec((tm, n), row),        # A_norm row tile
                  pl.BlockSpec((n, in_c), full),     # X (full)
                  pl.BlockSpec((in_c, hid), full),   # W1
                  pl.BlockSpec((1, hid), full),      # b1
                  pl.BlockSpec((tm, hid), row)],     # dropout scale tile
        out_specs=pl.BlockSpec((tm, hid), row),
        compiler_params=cparams,
    )(a_bf, x_bf, w1, b1, drop_scale)

    # --- GCNConv 2 + ReLU + Linear (padded lane-dense output) ---
    out_p = pl.pallas_call(
        _gcn_layer2_kernel,
        out_shape=jax.ShapeDtypeStruct((n, out_pad), jnp.float32),
        grid=grid,
        in_specs=[pl.BlockSpec((tm, n), row),        # A_norm row tile
                  pl.BlockSpec((n, hid), full),      # H1 (full)
                  pl.BlockSpec((hid, hid), full),    # W2
                  pl.BlockSpec((1, hid), full),      # b2
                  pl.BlockSpec((hid, out_pad), full),  # W3 (zero-padded)
                  pl.BlockSpec((1, out_pad), full)],   # b3 (zero-padded)
        out_specs=pl.BlockSpec((tm, out_pad), row),
        compiler_params=cparams,
    )(a_bf, h1, w2, b2, w3p, b3p)

    return out_p[:, :out_c]


def build_norm_adj(edge_index, num_nodes):
    """Dense GCN normalization: D^-1/2 (A + I) D^-1/2  (plain-JAX glue)."""
    src, dst = edge_index[0], edge_index[1]
    adj = jnp.zeros((num_nodes, num_nodes), jnp.float32)
    adj = adj.at[dst, src].add(1.0)                      # message src -> dst
    adj = adj + jnp.eye(num_nodes, dtype=jnp.float32)    # self loops
    deg = adj.sum(axis=1)
    dinv = jnp.where(deg > 0, jax.lax.rsqrt(deg), 0.0)
    return dinv[:, None] * adj * dinv[None, :]


if __name__ == "__main__":
    N, in_c, hid_c, out_c = 16, 8, 32, 4

    key = jax.random.PRNGKey(0)
    k = jax.random.split(key, 8)

    # Node features
    x = jax.random.normal(k[0], (N, in_c), jnp.float32)

    # Deterministic undirected ring graph: edge_index shape (2, 2N)
    src = jnp.arange(N, dtype=jnp.int32)
    dst = (src + 1) % N
    edge_index = jnp.stack([jnp.concatenate([src, dst]),
                            jnp.concatenate([dst, src])], axis=0)
    a_norm = build_norm_adj(edge_index, N)

    # Deterministic parameter init (glorot-ish), zero conv biases like defaults
    params = {
        "w1": jax.random.normal(k[1], (in_c, hid_c), jnp.float32) * (1.0 / jnp.sqrt(in_c)),
        "b1": jnp.zeros((1, hid_c), jnp.float32),
        "w2": jax.random.normal(k[2], (hid_c, hid_c), jnp.float32) * (1.0 / jnp.sqrt(hid_c)),
        "b2": jnp.zeros((1, hid_c), jnp.float32),
        "w3": jax.random.normal(k[3], (hid_c, out_c), jnp.float32) * (1.0 / jnp.sqrt(hid_c)),
        "b3": jax.random.normal(k[4], (1, out_c), jnp.float32) * 0.01,
    }

    out = gcn_forward(params, x, a_norm, dropout_key=k[5])
    jax.block_until_ready(out)
    assert out.shape == (N, out_c) and out.dtype == jnp.float32
    print("KERNEL_OK")
</pallas_src>

<mosaic_0001>
module attributes {stable_mosaic.version = 11 : i64} {
  func.func @_gcn_layer1_kernel(%arg0: i32, %arg1: memref<16x16xbf16, #tpu.memory_space<vmem>>, %arg2: memref<16x8xbf16, #tpu.memory_space<vmem>>, %arg3: memref<8x32xbf16, #tpu.memory_space<vmem>>, %arg4: memref<1x32xf32, #tpu.memory_space<vmem>>, %arg5: memref<16x32xf32, #tpu.memory_space<vmem>>, %arg6: memref<16x32xbf16, #tpu.memory_space<vmem>>) attributes {dimension_semantics = [#tpu.dimension_semantics<parallel>], iteration_bounds = array<i64: 1>, scalar_prefetch = 0 : i64, scratch_operands = 0 : i64, tpu.core_type = #tpu.core_type<tc>, window_params = [{transform_indices = @transform_0, window_bounds = array<i64: 16, 16>}, {pipeline_mode = #tpu.pipeline_mode<synchronous>, transform_indices = @transform_1, window_bounds = array<i64: 16, 8>}, {pipeline_mode = #tpu.pipeline_mode<synchronous>, transform_indices = @transform_2, window_bounds = array<i64: 8, 32>}, {pipeline_mode = #tpu.pipeline_mode<synchronous>, transform_indices = @transform_3, window_bounds = array<i64: 1, 32>}, {transform_indices = @transform_4, window_bounds = array<i64: 16, 32>}, {transform_indices = @transform_5, window_bounds = array<i64: 16, 32>}]} {
    %c0 = arith.constant 0 : index
    %c0_0 = arith.constant 0 : index
    %0 = vector.load %arg1[%c0, %c0_0] : memref<16x16xbf16, #tpu.memory_space<vmem>>, vector<16x16xbf16>
    %c0_1 = arith.constant 0 : index
    %c0_2 = arith.constant 0 : index
    %1 = vector.load %arg2[%c0_1, %c0_2] : memref<16x8xbf16, #tpu.memory_space<vmem>>, vector<16x8xbf16>
    %cst = arith.constant dense<0.000000e+00> : vector<16x8xf32>
    %2 = tpu.matmul %0, %1, %cst {dimension_numbers = #tpu.dot_dimension_numbers<[1], [0], [0], [1], [0, 0, 1, 1], [], []>} : vector<16x16xbf16>, vector<16x8xbf16>, vector<16x8xf32> -> vector<16x8xf32>
    %3 = arith.truncf %2 : vector<16x8xf32> to vector<16x8xbf16>
    %c0_3 = arith.constant 0 : index
    %c0_4 = arith.constant 0 : index
    %4 = vector.load %arg3[%c0_3, %c0_4] : memref<8x32xbf16, #tpu.memory_space<vmem>>, vector<8x32xbf16>
    %cst_5 = arith.constant dense<0.000000e+00> : vector<16x32xf32>
    %5 = tpu.matmul %3, %4, %cst_5 {dimension_numbers = #tpu.dot_dimension_numbers<[1], [0], [0], [1], [0, 0, 1, 1], [], []>} : vector<16x8xbf16>, vector<8x32xbf16>, vector<16x32xf32> -> vector<16x32xf32>
    %c0_6 = arith.constant 0 : index
    %c0_7 = arith.constant 0 : index
    %6 = vector.load %arg4[%c0_6, %c0_7] : memref<1x32xf32, #tpu.memory_space<vmem>>, vector<1x32xf32>
    %7 = vector.broadcast %6 : vector<1x32xf32> to vector<16x32xf32>
    %8 = arith.addf %5, %7 : vector<16x32xf32>
    %cst_8 = arith.constant 0.000000e+00 : f32
    %9 = vector.broadcast %cst_8 : f32 to vector<16x32xf32>
    %10 = arith.maximumf %8, %9 : vector<16x32xf32>
    %c0_9 = arith.constant 0 : index
    %c0_10 = arith.constant 0 : index
    %11 = vector.load %arg5[%c0_9, %c0_10] : memref<16x32xf32, #tpu.memory_space<vmem>>, vector<16x32xf32>
    %12 = arith.mulf %10, %11 : vector<16x32xf32>
    %13 = arith.truncf %12 : vector<16x32xf32> to vector<16x32xbf16>
    %c0_11 = arith.constant 0 : index
    %c0_12 = arith.constant 0 : index
    %14 = vector.load %arg6[%c0_11, %c0_12] : memref<16x32xbf16, #tpu.memory_space<vmem>>, vector<16x32xbf16>
    tpu.vector_store %arg6[%c0_11, %c0_12], %13 {strides = array<i32>} : memref<16x32xbf16, #tpu.memory_space<vmem>>, vector<16x32xbf16>,
    return
  }
  func.func @transform_0(%arg0: i32) -> (i32, i32) {
    %c0_i32 = arith.constant 0 : i32
    %c0_i32_0 = arith.constant 0 : i32
    return %arg0, %c0_i32 : i32, i32
  }
  func.func @transform_1(%arg0: i32) -> (i32, i32) {
    %c0_i32 = arith.constant 0 : i32
    %c0_i32_0 = arith.constant 0 : i32
    %c0_i32_1 = arith.constant 0 : i32
    return %c0_i32, %c0_i32_0 : i32, i32
  }
  func.func @transform_2(%arg0: i32) -> (i32, i32) {
    %c0_i32 = arith.constant 0 : i32
    %c0_i32_0 = arith.constant 0 : i32
    %c0_i32_1 = arith.constant 0 : i32
    return %c0_i32, %c0_i32_0 : i32, i32
  }
  func.func @transform_3(%arg0: i32) -> (i32, i32) {
    %c0_i32 = arith.constant 0 : i32
    %c0_i32_0 = arith.constant 0 : i32
    %c0_i32_1 = arith.constant 0 : i32
    return %c0_i32, %c0_i32_0 : i32, i32
  }
  func.func @transform_4(%arg0: i32) -> (i32, i32) {
    %c0_i32 = arith.constant 0 : i32
    %c0_i32_0 = arith.constant 0 : i32
    return %arg0, %c0_i32 : i32, i32
  }
  func.func @transform_5(%arg0: i32) -> (i32, i32) {
    %c0_i32 = arith.constant 0 : i32
    %c0_i32_0 = arith.constant 0 : i32
    return %arg0, %c0_i32 : i32, i32
  }
}

</mosaic_0001>

<bundles_post_ra>
// kernel: tpu_custom_call.1
= control target key start
LH: loop header
LB: loop body
LE: loop exit
PB: predicated region body
PF: predicated region fallthrough
CT: control target
= control target key end

     0   :  { %10 = vsyncpa [#allocation3], 0  ;;  %s342_s0 = inlined_call_operand.vmem [shape: bf16[16,16], index: 0, kind: input, shape index: {}]   ;;  %s343_s1 = inlined_call_operand.vmem [shape: bf16[16,8], index: 1, kind: input, shape index: {}]   ;;  %s344_s2 = inlined_call_operand.hbm [shape: bf16[8,32], index: 2, kind: input, shape index: {}]   ;;  %s345_s3 = inlined_call_operand.vmem [shape: f32[1,32], index: 3, kind: input, shape index: {}]   ;;  %s346_s4 = inlined_call_operand.vmem [shape: f32[16,32], index: 4, kind: input, shape index: {}]   ;;  %s347_s5 = inlined_call_operand.hbm [shape: bf16[16,32], index: 5, kind: output, shape index: {}]  }
   0x1   :  { %11 = vsyncpa [#allocation4], 0  ;;  %s267_s18 = smov [#allocation2]   ;;  %s219_s22 = scalar_lea.hbm %s344_s2, 64 }
   0x2   :  { %s22_s19 = sshll.u32 %s267_s18, 4  ;;  %p220_p0 = scmp.ne.s32.totalorder %s344_s2, %s219_s22  ;;  %s23_s19 = int_to_ptr.vmem [resolvable:$true] %s22_s19 }
   0x3   :  { %p223_p1 = scmp.lt.u32.totalorder %s219_s22, %s344_s2 }
   0x5   :  { %p225_p2 = pnand %p223_p1, %p220_p0 }
   0x7   :  { %228 = shalt.err (!%p225_p2)
}
   0x8   :  { %s229_s27 = scalar_lea.vmem %s23_s19, 64  ;;  %p234_p4 = scmp.lt.s32.totalorder %s23_s19, %s23_s19 }
   0x9   :  { %p230_p3 = scmp.ne.s32.totalorder %s23_s19, %s229_s27  ;;  %p235_p5 = scmp.lt.s32.totalorder %s229_s27, %s229_s27 }
   0xb   :  { %p236_p6 = por %p235_p5, %p234_p4 }
   0xd   :  { %p237_p7 = pnand %p236_p6, %p230_p3 }
   0xf   :  { %240 = shalt.err (!%p237_p7)
}
  0x10   :  { %25 = dma.hbm_to_vmem [thread:$0]  %s344_s2, 64, %s23_s19, [#allocation3]  }
  0x11   :  { %263 = dma.done.wait [#allocation3], 64  }
  0x12   :  { %264 = vsyncadd [#allocation3], 4294967232  ;;  %v268_v0 = vmov 0.0   ;;  %vm269_vm0 = vmmov 0   ;;  %v217_v1 = vld [vmem:[%s343_s1] sm:$0xff]   ;;  %vm49_vm1 = vcmask 130048  }
  0x13   :  { %199 = vmatprep.subr.bf16.mxu0 %v268_v0  ;;  %201 = vmatprep.mubr.msk.bf16.mxu0 %vm269_vm0, %v268_v0  ;;  %v218_v2 = vld [vmem:[%s342_s0] sm:$0xff]   ;;  %vm107_vm2 = vcmask 1043456   ;;  %vm103_vm3 = vcmask 64512   ;;  %v155_v19 = vld [vmem:[%s346_s4 + $0x8] sm:$0xff]  ;;  %s270_s12 = smov [#allocation5]   ;;  %vm166_vm4 = vcmask 257024  }
  0x14   :  { %205 = vmatprep.subr.bf16.mxu1 %v268_v0  ;;  %207 = vmatprep.mubr.msk.bf16.mxu1 %vm269_vm0, %v268_v0  ;;  %v95_v3 = vld [vmem:[#allocation2] sm:$0xf]  ;;  %s174_s13 = sshll.u32 %s270_s12, 4  ;;  %s175_s13 = int_to_ptr.vmem [resolvable:$true] %s174_s13 }
  0x15   :  { %200 = vmatpush3.bf16.msra.mxu0 %v217_v1  ;;  %v109_v4 = vsel %vm107_vm2, %v95_v3, 0  ;;  %v189_v10 = vld [vmem:[%s345_s3] ss:$0 sm:$0xff]  ;;  %s241_s3 = scalar_lea.vmem %s175_s13, 128  ;;  %p246_p9 = scmp.lt.s32.totalorder %s175_s13, %s175_s13 }
  0x16   :  { %206 = vmatpush3.bf16.msra.mxu1 %v109_v4  ;;  %v154_v14 = vld [vmem:[%s346_s4] sm:$0xff]  ;;  %p242_p8 = scmp.ne.s32.totalorder %s175_s13, %s241_s3  ;;  %p247_p10 = scmp.lt.s32.totalorder %s241_s3, %s241_s3 }
  0x18   :  { %202 = vmatmul.mubr.msk.bf16.vlgmr.msra.gmra.mrb[0].mxu0 %vm49_vm1, %v218_v2  ;;  %p248_p11 = por %p247_p10, %p246_p9 }
  0x1a   :  { %p249_p12 = pnand %p248_p11, %p242_p8 }
  0xeb   :  { %v87_v5 = vpop.f32.mrb[0].mxu0 }
  0xec   :  { %v203_v6 = vpop.f32.mrb[1].mxu0 }
  0xed   :  { %v90_v7 = vpop.f32.mrb[2].mxu0 }
  0xee   :  { %v94_v8 = vpack.c.bf16 %v90_v7, %v87_v5  ;;  %v204_v9 = vpop.f32.mrb[3].mxu0 }
  0xf0   :  { %208 = vmatmul.mubr.msk.bf16.vlgmr.msra.gmra.mrb[0].mxu1 %vm103_vm3, %v94_v8 }
 0x1c3   :  { %v145_v11 = vpop.f32.mrb[0].mxu1 }
 0x1c4   :  { %v146_v12 = vadd.f32 %v189_v10, %v145_v11  ;;  %v209_v13 = vpop.f32.mrb[1].mxu1 }
 0x1c5   :  { %v148_v15 = vpop.f32.mrb[2].mxu1 }
 0x1c6   :  { %v152_v16 = vmax.f32 %v146_v12, 0.0  ;;  %v149_v17 = vadd.f32 %v189_v10, %v148_v15  ;;  %v210_v18 = vpop.f32.mrb[3].mxu1 }
 0x1c8   :  { %v156_v20 = vmul.f32 %v154_v14, %v152_v16  ;;  %v153_v21 = vmax.f32 %v149_v17, 0.0 }
 0x1ca   :  { %v193_v22 = vpack.c.bf16 %v156_v20, %v156_v20  ;;  %v157_v23 = vmul.f32 %v155_v19, %v153_v21 }
 0x1cc   :  { %167 = vst.msk [vmem:[#allocation5] sm:$0xf] %vm166_vm4, %v193_v22  ;;  %v194_v24 = vpack.c.bf16 %v157_v23, %v157_v23 }
 0x1ce   :  { %168 = vst.msk [vmem:[#allocation5 + $0x4] sm:$0xf] %vm166_vm4, %v194_v24 }
 0x1cf   :  { %252 = shalt.err (!%p249_p12)
}
 0x1d0   :  { %s253_s15 = scalar_lea.hbm %s347_s5, 128 }
 0x1d1   :  { %p254_p13 = scmp.ne.s32.totalorder %s347_s5, %s253_s15  ;;  %p257_p0 = scmp.lt.u32.totalorder %s253_s15, %s347_s5 }
 0x1d3   :  { %p259_p1 = pnand %p257_p0, %p254_p13 }
 0x1d5   :  { %262 = shalt.err (!%p259_p1)
}
 0x1d6   :  { %s271_s20 = smov 64   ;;  %s272_s21 = smov 4  }
 0x1d7   :  { %180 = dma.vmem_to_hbm [thread:$0]  %s175_s13, 128, %s347_s5, [#allocation4], %s271_s20, %s271_s20, %s272_s21  }
 0x1d8   :  { %265 = dma.done.wait [#allocation4], 128  }
 0x1d9   :  { %266 = vsyncadd [#allocation4], 4294967168 }
 0x1da   :  { %184 = vsyncpa [#allocation3], 1 }
 0x1db   :  { %185 = vsyncpa [#allocation4], 1 }

</bundles_post_ra>
